<compile_context>
chip_gen: v7x
topology: tpu7x:2x2x1
jax: 0.10.0
libtpu: 0.0.40
codegen_flags: <defaults>
</compile_context>

<pallas_src>
import functools
import math

import jax
import jax.numpy as jnp
from jax.experimental import pallas as pl
from jax.experimental.pallas import tpu as pltpu

LANE = 128


def _round_up(a: int, b: int) -> int:
    return (a + b - 1) // b * b


def _tile_bytes(r: int, c: int, itemsize: int = 4) -> int:
    return _round_up(r, 8) * _round_up(c, LANE) * itemsize


def _channel_attention_kernel(x_ref, g_ref, w_ref, b_ref, o_ref,
                              sum_acc, max_acc, *, hw, hw_block, need_mask):
    # x_ref:   (R, hw_block)   packed rows (R = TB*C), one spatial tile
    # g_ref:   (TB, R)         group-sum matrix, G[b, b*C + c] = 1
    # w_ref:   (R, O)          conv1 weight, transposed + row-tiled TB times
    # b_ref:   (1, O)          conv1 bias
    # o_ref:   (TB, O)         output block (leading grid dim squeezed)
    # sum_acc: (R, LANE) f32   per-lane running spatial sum
    # max_acc: (R, LANE) f32   per-lane running spatial max
    k = pl.program_id(1)
    last_k = pl.num_programs(1) - 1          # static
    nchunks = hw_block // LANE

    @pl.when(k == 0)
    def _init():
        sum_acc[...] = jnp.zeros_like(sum_acc)
        max_acc[...] = jnp.full_like(max_acc, -jnp.inf)

    def _accumulate(masked):
        # Per-lane accumulation over aligned 128-lane chunks; the cross-lane
        # reduction happens exactly once, in the finalize step (saves the
        # per-step XLU reduce and the masked (R,1) scratch stores).
        s = sum_acc[...]
        m = max_acc[...]
        base = last_k * hw_block if masked else 0          # static int
        for j in range(nchunks):
            lo = j * LANE
            if masked and base + lo >= hw:
                break                        # remaining chunks are all padding
            chunk = x_ref[:, lo:lo + LANE].astype(jnp.float32)
            s = s + chunk                    # zero padding is sum-neutral
            if masked and base + lo + LANE > hw:
                # only the single boundary chunk pays iota+compare+select
                lane = jax.lax.broadcasted_iota(jnp.int32, chunk.shape, 1)
                chunk = jnp.where(lane + (base + lo) < hw, chunk, -jnp.inf)
            m = jnp.maximum(m, chunk)
        sum_acc[...] = s
        max_acc[...] = m

    if need_mask:
        # Only the very last spatial block contains padded lanes; keep the
        # steady-state loop free of masking work.
        @pl.when(k < last_k)
        def _steady():
            _accumulate(masked=False)

        @pl.when(k == last_k)
        def _last():
            _accumulate(masked=True)
    else:
        _accumulate(masked=False)

    @pl.when(k == last_k)
    def _finalize():
        # s[r] = mean + max for packed row r = b*C + c
        s = (jnp.sum(sum_acc[...], axis=-1, keepdims=True) * (1.0 / hw)
             + jnp.max(max_acc[...], axis=-1, keepdims=True))       # (R, 1)
        # out[b, o] = sum_c s[b*C + c] * W[c, o]  ==  G @ (s * W_rep)
        y = jnp.dot(g_ref[...], s * w_ref[...],
                    preferred_element_type=jnp.float32)              # (TB, O)
        o_ref[...] = y + 2.0 * b_ref[...]


def _choose_tiles(n, c, hw, itemsize, budget_bytes=4 * 1024 * 1024):
    """Pick (TB, n_pad, hw_block, hw_pad) honoring (8, 128) tiling & VMEM.

    Spatial tile grows FIRST (better HBM pipelining at zero resident-weight
    cost).  The batch block TB grows only with leftover budget, is capped so
    the dense G matrix (TB, TB*C) stays <= ~1 MiB, and is shrunk (when the
    batch allows it) so there are >= 2 batch blocks for v7x's 2 TensorCores.
    """
    tb_unit = 8 // math.gcd(c, 8)            # smallest TB with TB*C % 8 == 0

    hw_block = min(_round_up(hw, LANE), 16384)
    while hw_block > LANE and tb_unit * c * hw_block * itemsize > budget_bytes:
        hw_block = max(LANE, (hw_block // 2) // LANE * LANE)
    hw_pad = _round_up(hw, hw_block)

    # Batch block: leftover budget, G-size cap, and >= 2 blocks when possible.
    max_tb_budget = max(tb_unit,
                        (budget_bytes // (c * hw_block * itemsize))
                        // tb_unit * tb_unit)
    max_tb_g = tb_unit
    while (2 * max_tb_g) * (2 * max_tb_g) * c * 4 <= (1 << 20):
        max_tb_g *= 2
    tb = min(max_tb_budget, max_tb_g, _round_up(n, tb_unit))
    while tb > tb_unit and _round_up(n, tb) // tb < 2:
        tb = max(tb_unit, (tb // 2) // tb_unit * tb_unit)

    n_pad = _round_up(n, tb)
    return tb, n_pad, hw_block, hw_pad


def channel_attention(x, weight, bias, *, _force_hw_block=None):
    """x: (N, C, H, W) f32/bf16; weight: (O, C, 1, 1); bias: (O,).

    Returns (N, O, 1, 1) f32, matching ChannelAttention.forward (ratio<=0).
    """
    N, C, H, W = x.shape
    O = weight.shape[0]
    HW = H * W

    if x.dtype not in (jnp.float32, jnp.bfloat16):
        x = x.astype(jnp.float32)
    itemsize = jnp.dtype(x.dtype).itemsize

    TB, n_pad, hw_block, hw_pad = _choose_tiles(N, C, HW, itemsize)
    if _force_hw_block is not None:          # test hook: force multi-block path
        hw_block = _force_hw_block
        hw_pad = _round_up(HW, hw_block)
    R = TB * C
    n_blocks = n_pad // TB
    hw_blocks = hw_pad // hw_block
    need_mask = hw_pad != HW

    # Pack rows (batch*channel on sublanes), zero-pad rows and lanes.
    x_flat = x.reshape(N * C, HW)
    x_flat = jnp.pad(x_flat, ((0, n_pad * C - N * C), (0, hw_pad - HW)))

    w_t = weight.reshape(O, C).T.astype(jnp.float32)             # (C, O)
    w_rep = jnp.tile(w_t, (TB, 1))                               # (R, O)
    g = jnp.repeat(jnp.eye(TB, dtype=jnp.float32), C, axis=1)    # (TB, R)
    b2 = bias.reshape(1, O).astype(jnp.float32)

    kernel = functools.partial(_channel_attention_kernel,
                               hw=HW, hw_block=hw_block, need_mask=need_mask)

    # VMEM accounting from ACTUAL double-buffered operand sizes (+ headroom),
    # clamped well below v7x's 64 MiB physical VMEM.
    x_block_bytes = R * hw_block * itemsize
    resident_bytes = (_tile_bytes(TB, R) + _tile_bytes(R, O)
                      + _tile_bytes(1, O) + _tile_bytes(TB, O))
    scratch_bytes = 2 * _tile_bytes(R, LANE)
    vmem_needed = 2 * x_block_bytes + 2 * resident_bytes + scratch_bytes
    vmem_limit = int(min(48 * 1024 * 1024,
                         max(16 * 1024 * 1024,
                             vmem_needed + 4 * 1024 * 1024)))

    cost = pl.CostEstimate(
        flops=2 * N * C * HW + 2 * n_blocks * TB * R * O,
        transcendentals=0,
        bytes_accessed=N * C * HW * itemsize + (C * O + O + N * O) * 4,
    )

    out = pl.pallas_call(
        kernel,
        out_shape=jax.ShapeDtypeStruct((n_blocks, TB, O), jnp.float32),
        grid_spec=pltpu.PrefetchScalarGridSpec(
            num_scalar_prefetch=0,
            grid=(n_blocks, hw_blocks),
            in_specs=[
                pl.BlockSpec((R, hw_block), lambda i, k: (i, k)),
                pl.BlockSpec((TB, R), lambda i, k: (0, 0)),
                pl.BlockSpec((R, O), lambda i, k: (0, 0)),
                pl.BlockSpec((1, O), lambda i, k: (0, 0)),
            ],
            out_specs=pl.BlockSpec((None, TB, O), lambda i, k: (i, 0, 0)),
            scratch_shapes=[
                pltpu.VMEM((R, LANE), jnp.float32),
                pltpu.VMEM((R, LANE), jnp.float32),
            ],
        ),
        compiler_params=pltpu.CompilerParams(
            dimension_semantics=("parallel", "arbitrary"),
            vmem_limit_bytes=vmem_limit,
        ),
        cost_estimate=cost,
    )(x_flat, g, w_rep, b2)

    out = out.reshape(n_pad, O)[:N]
    return out.reshape(N, O, 1, 1)


def _reference(x, weight, bias):
    O, C = weight.shape[0], weight.shape[1]
    wmat = weight.reshape(O, C)
    avg = jnp.mean(x, axis=(2, 3))
    mx = jnp.max(x, axis=(2, 3))
    return ((avg @ wmat.T + bias) + (mx @ wmat.T + bias)).reshape(
        x.shape[0], O, 1, 1)


if __name__ == "__main__":
    # in_channel=4, out_channel=8, ratio=0 (default branch of the module)
    N, C, H, W = 2, 4, 16, 16
    O = 8

    key = jax.random.PRNGKey(0)
    kx, kw, kb = jax.random.split(key, 3)
    x = jax.random.normal(kx, (N, C, H, W), dtype=jnp.float32)
    weight = jax.random.normal(kw, (O, C, 1, 1), dtype=jnp.float32) * 0.1
    bias = jax.random.normal(kb, (O,), dtype=jnp.float32) * 0.1

    out = jax.block_until_ready(channel_attention(x, weight, bias))
    ref = _reference(x, weight, bias)
    assert out.shape == (N, O, 1, 1)
    assert jnp.allclose(out, ref, atol=1e-4, rtol=1e-4)

    # Non-multiple-of-128 spatial size with all-negative inputs: zero-padded
    # lanes must NOT clamp the max at 0 (exercises the masked last block).
    H2, W2 = 7, 7
    x2 = -jnp.abs(jax.random.normal(kx, (N, C, H2, W2), dtype=jnp.float32)) - 1.0
    out2 = jax.block_until_ready(channel_attention(x2, weight, bias))
    ref2 = _reference(x2, weight, bias)
    assert jnp.allclose(out2, ref2, atol=1e-4, rtol=1e-4)

    # Multi-spatial-block path (steady unmasked blocks + masked last block),
    # forced via a small hw_block, again with all-negative inputs.
    H3, W3 = 20, 20
    x3 = -jnp.abs(jax.random.normal(kx, (N, C, H3, W3), dtype=jnp.float32)) - 1.0
    out3 = jax.block_until_ready(
        channel_attention(x3, weight, bias, _force_hw_block=128))
    ref3 = _reference(x3, weight, bias)
    assert jnp.allclose(out3, ref3, atol=1e-4, rtol=1e-4)

    print("KERNEL_OK")
</pallas_src>

<mosaic_0001>
module attributes {stable_mosaic.version = 11 : i64} {
  func.func @_channel_attention_kernel(%arg0: i32, %arg1: i32, %arg2: memref<8x256xf32, #tpu.memory_space<vmem>>, %arg3: memref<2x8xf32, #tpu.memory_space<vmem>>, %arg4: memref<8x8xf32, #tpu.memory_space<vmem>>, %arg5: memref<1x8xf32, #tpu.memory_space<vmem>>, %arg6: memref<1x2x8xf32, #tpu.memory_space<vmem>>, %arg7: memref<8x128xf32, #tpu.memory_space<vmem>>, %arg8: memref<8x128xf32, #tpu.memory_space<vmem>>) attributes {dimension_semantics = [#tpu.dimension_semantics<parallel>, #tpu.dimension_semantics<arbitrary>], iteration_bounds = array<i64: 1, 1>, scalar_prefetch = 0 : i64, scratch_operands = 2 : i64, tpu.core_type = #tpu.core_type<tc>, window_params = [{transform_indices = @transform_0, window_bounds = array<i64: 8, 256>}, {pipeline_mode = #tpu.pipeline_mode<synchronous>, transform_indices = @transform_1, window_bounds = array<i64: 2, 8>}, {pipeline_mode = #tpu.pipeline_mode<synchronous>, transform_indices = @transform_2, window_bounds = array<i64: 8, 8>}, {pipeline_mode = #tpu.pipeline_mode<synchronous>, transform_indices = @transform_3, window_bounds = array<i64: 1, 8>}, {transform_indices = @transform_4, window_bounds = array<i64: 1, 2, 8>}]} {
    %c0_i32 = arith.constant 0 : i32
    %0 = arith.cmpi eq, %arg1, %c0_i32 : i32
    %1 = arith.extui %0 : i1 to i32
    %c0_i32_0 = arith.constant 0 : i32
    %2 = arith.cmpi ne, %1, %c0_i32_0 : i32
    scf.if %2 {
      %cst = arith.constant 0.000000e+00 : f32
      %16 = vector.broadcast %cst : f32 to vector<8x128xf32>
      %c0_13 = arith.constant 0 : index
      %c0_14 = arith.constant 0 : index
      %17 = vector.load %arg7[%c0_13, %c0_14] : memref<8x128xf32, #tpu.memory_space<vmem>>, vector<8x128xf32>
      tpu.vector_store %arg7[%c0_13, %c0_14], %16 {strides = array<i32>} : memref<8x128xf32, #tpu.memory_space<vmem>>, vector<8x128xf32>,
      %cst_15 = arith.constant 0xFF800000 : f32
      %18 = vector.broadcast %cst_15 : f32 to vector<8x128xf32>
      %c0_16 = arith.constant 0 : index
      %c0_17 = arith.constant 0 : index
      %19 = vector.load %arg8[%c0_16, %c0_17] : memref<8x128xf32, #tpu.memory_space<vmem>>, vector<8x128xf32>
      tpu.vector_store %arg8[%c0_16, %c0_17], %18 {strides = array<i32>} : memref<8x128xf32, #tpu.memory_space<vmem>>, vector<8x128xf32>,
    } else {
    }
    %c0 = arith.constant 0 : index
    %c0_1 = arith.constant 0 : index
    %3 = vector.load %arg7[%c0, %c0_1] : memref<8x128xf32, #tpu.memory_space<vmem>>, vector<8x128xf32>
    %c0_2 = arith.constant 0 : index
    %c0_3 = arith.constant 0 : index
    %4 = vector.load %arg8[%c0_2, %c0_3] : memref<8x128xf32, #tpu.memory_space<vmem>>, vector<8x128xf32>
    %c0_4 = arith.constant 0 : index
    %c0_5 = arith.constant 0 : index
    %5 = vector.load %arg2[%c0_4, %c0_5] : memref<8x256xf32, #tpu.memory_space<vmem>>, vector<8x128xf32>
    %6 = arith.addf %3, %5 : vector<8x128xf32>
    %7 = arith.maximumf %4, %5 : vector<8x128xf32>
    %c0_6 = arith.constant 0 : index
    %c128 = arith.constant 128 : index
    %8 = vector.load %arg2[%c0_6, %c128] : memref<8x256xf32, #tpu.memory_space<vmem>>, vector<8x128xf32>
    %9 = arith.addf %6, %8 : vector<8x128xf32>
    %10 = arith.maximumf %7, %8 : vector<8x128xf32>
    %c0_7 = arith.constant 0 : index
    %c0_8 = arith.constant 0 : index
    %11 = vector.load %arg7[%c0_7, %c0_8] : memref<8x128xf32, #tpu.memory_space<vmem>>, vector<8x128xf32>
    tpu.vector_store %arg7[%c0_7, %c0_8], %9 {strides = array<i32>} : memref<8x128xf32, #tpu.memory_space<vmem>>, vector<8x128xf32>,
    %c0_9 = arith.constant 0 : index
    %c0_10 = arith.constant 0 : index
    %12 = vector.load %arg8[%c0_9, %c0_10] : memref<8x128xf32, #tpu.memory_space<vmem>>, vector<8x128xf32>
    tpu.vector_store %arg8[%c0_9, %c0_10], %10 {strides = array<i32>} : memref<8x128xf32, #tpu.memory_space<vmem>>, vector<8x128xf32>,
    %c0_i32_11 = arith.constant 0 : i32
    %13 = arith.cmpi eq, %arg1, %c0_i32_11 : i32
    %14 = arith.extui %13 : i1 to i32
    %c0_i32_12 = arith.constant 0 : i32
    %15 = arith.cmpi ne, %14, %c0_i32_12 : i32
    scf.if %15 {
      %c0_13 = arith.constant 0 : index
      %c0_14 = arith.constant 0 : index
      %16 = vector.load %arg7[%c0_13, %c0_14] : memref<8x128xf32, #tpu.memory_space<vmem>>, vector<8x128xf32>
      %cst = arith.constant dense<0.000000e+00> : vector<8xf32>
      %17 = vector.multi_reduction <add>, %16, %cst [1] : vector<8x128xf32> to vector<8xf32>
      %18 = vector.shape_cast %17 : vector<8xf32> to vector<8x1xf32>
      %cst_15 = arith.constant 3.906250e-03 : f32
      %19 = vector.broadcast %cst_15 : f32 to vector<8x1xf32>
      %20 = arith.mulf %18, %19 : vector<8x1xf32>
      %c0_16 = arith.constant 0 : index
      %c0_17 = arith.constant 0 : index
      %21 = vector.load %arg8[%c0_16, %c0_17] : memref<8x128xf32, #tpu.memory_space<vmem>>, vector<8x128xf32>
      %cst_18 = arith.constant dense<0xFF800000> : vector<8xf32>
      %22 = vector.multi_reduction <maximumf>, %21, %cst_18 [1] : vector<8x128xf32> to vector<8xf32>
      %23 = vector.shape_cast %22 : vector<8xf32> to vector<8x1xf32>
      %24 = arith.addf %20, %23 : vector<8x1xf32>
      %c0_19 = arith.constant 0 : index
      %c0_20 = arith.constant 0 : index
      %25 = vector.load %arg3[%c0_19, %c0_20] : memref<2x8xf32, #tpu.memory_space<vmem>>, vector<2x8xf32>
      %c0_21 = arith.constant 0 : index
      %c0_22 = arith.constant 0 : index
      %26 = vector.load %arg4[%c0_21, %c0_22] : memref<8x8xf32, #tpu.memory_space<vmem>>, vector<8x8xf32>
      %27 = vector.broadcast %24 : vector<8x1xf32> to vector<8x8xf32>
      %28 = arith.mulf %27, %26 : vector<8x8xf32>
      %cst_23 = arith.constant dense<0.000000e+00> : vector<2x8xf32>
      %29 = tpu.matmul %25, %28, %cst_23 {dimension_numbers = #tpu.dot_dimension_numbers<[1], [0], [0], [1], [0, 0, 1, 1], [], []>} : vector<2x8xf32>, vector<8x8xf32>, vector<2x8xf32> -> vector<2x8xf32>
      %c0_24 = arith.constant 0 : index
      %c0_25 = arith.constant 0 : index
      %30 = vector.load %arg5[%c0_24, %c0_25] : memref<1x8xf32, #tpu.memory_space<vmem>>, vector<1x8xf32>
      %cst_26 = arith.constant 2.000000e+00 : f32
      %31 = vector.broadcast %cst_26 : f32 to vector<1x8xf32>
      %32 = arith.mulf %31, %30 : vector<1x8xf32>
      %33 = vector.broadcast %32 : vector<1x8xf32> to vector<2x8xf32>
      %34 = arith.addf %29, %33 : vector<2x8xf32>
      %c0_27 = arith.constant 0 : index
      %c0_28 = arith.constant 0 : index
      %c0_29 = arith.constant 0 : index
      %35 = vector.load %arg6[%c0_27, %c0_28, %c0_29] : memref<1x2x8xf32, #tpu.memory_space<vmem>>, vector<1x2x8xf32>
      %36 = vector.shape_cast %35 : vector<1x2x8xf32> to vector<2x8xf32>
      %37 = vector.shape_cast %34 : vector<2x8xf32> to vector<1x2x8xf32>
      tpu.vector_store %arg6[%c0_27, %c0_28, %c0_29], %37 {strides = array<i32>} : memref<1x2x8xf32, #tpu.memory_space<vmem>>, vector<1x2x8xf32>,
    } else {
    }
    return
  }
  func.func @transform_0(%arg0: i32, %arg1: i32) -> (i32, i32) {
    %c0_i32 = arith.constant 0 : i32
    return %arg0, %arg1 : i32, i32
  }
  func.func @transform_1(%arg0: i32, %arg1: i32) -> (i32, i32) {
    %c0_i32 = arith.constant 0 : i32
    %c0_i32_0 = arith.constant 0 : i32
    %c0_i32_1 = arith.constant 0 : i32
    return %c0_i32, %c0_i32_0 : i32, i32
  }
  func.func @transform_2(%arg0: i32, %arg1: i32) -> (i32, i32) {
    %c0_i32 = arith.constant 0 : i32
    %c0_i32_0 = arith.constant 0 : i32
    %c0_i32_1 = arith.constant 0 : i32
    return %c0_i32, %c0_i32_0 : i32, i32
  }
  func.func @transform_3(%arg0: i32, %arg1: i32) -> (i32, i32) {
    %c0_i32 = arith.constant 0 : i32
    %c0_i32_0 = arith.constant 0 : i32
    %c0_i32_1 = arith.constant 0 : i32
    return %c0_i32, %c0_i32_0 : i32, i32
  }
  func.func @transform_4(%arg0: i32, %arg1: i32) -> (i32, i32, i32) {
    %c0_i32 = arith.constant 0 : i32
    %c0_i32_0 = arith.constant 0 : i32
    %c0_i32_1 = arith.constant 0 : i32
    return %arg0, %c0_i32, %c0_i32_0 : i32, i32, i32
  }
}

</mosaic_0001>

<bundles_post_ra>
// kernel: tpu_custom_call.1
= control target key start
LH: loop header
LB: loop body
LE: loop exit
PB: predicated region body
PF: predicated region fallthrough
CT: control target
= control target key end

     0   :  { %9 = vsyncpa [#allocation5], 0  ;;  %s329_s0 = inlined_call_operand.hbm [shape: f32[8,256], index: 0, kind: input, shape index: {}]   ;;  %s330_s1 = inlined_call_operand.vmem [shape: f32[2,8], index: 1, kind: input, shape index: {}]   ;;  %s331_s2 = inlined_call_operand.hbm [shape: f32[8,8], index: 2, kind: input, shape index: {}]   ;;  %s332_s3 = inlined_call_operand.vmem [shape: f32[1,8], index: 3, kind: input, shape index: {}]   ;;  %s333_s4 = inlined_call_operand.hbm [shape: f32[1,2,8], index: 4, kind: output, shape index: {}]  }
   0x1   :  { %10 = vsyncpa [#allocation8], 0 }
   0x2   :  { %11 = vsyncpa [#allocation6], 0  ;;  %s257_s15 = smov [#allocation4]   ;;  %s258_s17 = smov [#allocation7]  }
   0x3   :  { %s18_s16 = sshll.u32 %s257_s15, 4  ;;  %s30_s18 = sshll.u32 %s258_s17, 4  ;;  %s19_s16 = int_to_ptr.vmem [resolvable:$true] %s18_s16  ;;  %s31_s18 = int_to_ptr.vmem [resolvable:$true] %s30_s18 }
   0x4   :  { %s185_s21 = scalar_lea.hbm %s329_s0, 256 }
   0x5   :  { %p186_p0 = scmp.ne.s32.totalorder %s329_s0, %s185_s21  ;;  %p189_p1 = scmp.lt.u32.totalorder %s185_s21, %s329_s0 }
   0x7   :  { %p191_p2 = pnand %p189_p1, %p186_p0 }
   0x9   :  { %194 = shalt.err (!%p191_p2)
}
   0xa   :  { %s195_s26 = scalar_lea.vmem %s19_s16, 256  ;;  %p200_p4 = scmp.lt.s32.totalorder %s19_s16, %s19_s16 }
   0xb   :  { %p196_p3 = scmp.ne.s32.totalorder %s19_s16, %s195_s26  ;;  %p201_p5 = scmp.lt.s32.totalorder %s195_s26, %s195_s26 }
   0xd   :  { %p202_p6 = por %p201_p5, %p200_p4 }
   0xf   :  { %p203_p7 = pnand %p202_p6, %p196_p3 }
  0x11   :  { %206 = shalt.err (!%p203_p7)
}
  0x12   :  { %21 = dma.hbm_to_vmem [thread:$0]  %s329_s0, 256, %s19_s16, [#allocation5]  }
  0x13   :  { %s207_s5 = scalar_lea.hbm %s331_s2, 128 }
  0x14   :  { %p208_p8 = scmp.ne.s32.totalorder %s331_s2, %s207_s5  ;;  %p211_p9 = scmp.lt.u32.totalorder %s207_s5, %s331_s2 }
  0x16   :  { %p213_p10 = pnand %p211_p9, %p208_p8 }
  0x18   :  { %216 = shalt.err (!%p213_p10)
}
  0x19   :  { %s217_s10 = scalar_lea.vmem %s31_s18, 128  ;;  %p222_p12 = scmp.lt.s32.totalorder %s31_s18, %s31_s18 }
  0x1a   :  { %p218_p11 = scmp.ne.s32.totalorder %s31_s18, %s217_s10  ;;  %p223_p13 = scmp.lt.s32.totalorder %s217_s10, %s217_s10 }
  0x1c   :  { %p224_p0 = por %p223_p13, %p222_p12 }
  0x1e   :  { %p225_p1 = pnand %p224_p0, %p218_p11 }
  0x20   :  { %228 = shalt.err (!%p225_p1)
}
  0x21   :  { %33 = dma.hbm_to_vmem [thread:$0]  %s331_s2, 128, %s31_s18, [#allocation8]  }
  0x22   :  { %251 = dma.done.wait [#allocation5], 256  }
  0x23   :  { %252 = vsyncadd [#allocation5], 4294967040 }
  0x24   :  { %253 = dma.done.wait [#allocation8], 128  }
  0x25   :  { %254 = vsyncadd [#allocation8], 4294967168  ;;  %v50_v0 = vld [vmem:[#allocation4] sm:$0xff]  ;;  %v53_v1 = vld [vmem:[#allocation4 + $0x8] sm:$0xff]  ;;  %v259_v4 = vmov 0.0   ;;  %vm260_vm0 = vmmov 0   ;;  %v75_v12 = vlaneseq }
  0x26   :  { %v54_v2 = vadd.f32 %v53_v1, %v50_v0  ;;  %v55_v3 = vmax.f32 %v50_v0, %v53_v1  ;;  %175 = vmatprep.subr.mxu0 %v259_v4  ;;  %177 = vmatprep.mubr.msk.f32.mxu0 %vm260_vm0, %v259_v4  ;;  %v70_v8 = vld [vmem:[#allocation7] sm:$0xff]  ;;  %v69_v11 = vld [vmem:[%s330_s1] sm:$0x3]  ;;  %vm80_vm1 = vcmask 64512   ;;  %s261_s15 = smov [#allocation9]   ;;  %vm154_vm2 = vcmask 58368  }
  0x27   :  { %v76_v13 = vshrl.u32 %v75_v12, 7  ;;  %v72_v14 = vld [vmem:[%s332_s3] sm:$0x1]  ;;  %s162_s16 = sshll.u32 %s261_s15, 4  ;;  %s163_s16 = int_to_ptr.vmem [resolvable:$true] %s162_s16 }
  0x28   :  { %62 = vadd.xlane.f32.xlu0 %v54_v2  ;;  %v73_v15 = vmul.f32 2.0, %v72_v14  ;;  %s229_s1 = scalar_lea.vmem %s163_s16, 32  ;;  %p234_p3 = scmp.lt.s32.totalorder %s163_s16, %s163_s16 }
  0x29   :  { %v77_v16 = vsub.s32 0, %v76_v13  ;;  %p230_p2 = scmp.ne.s32.totalorder %s163_s16, %s229_s1  ;;  %p235_p4 = scmp.lt.s32.totalorder %s229_s1, %s229_s1 }
  0x2b   :  { %v78_v17 = vrot.slane %v73_v15, %v77_v16  ;;  %p236_p5 = por %p235_p4, %p234_p3 }
  0x2c   :  { %66 = vmax.xlane.f32.xlu0 %v55_v3 }
  0x2d   :  { %p237_p6 = pnand %p236_p5, %p230_p2 }
  0xb5   :  { %v63_v5 = vpop.xlane.xlu0 %62 }
  0xb6   :  { %v64_v6 = vmul.f32 0.00390625, %v63_v5 }
  0xb9   :  { %v67_v7 = vpop.xlane.xlu0 %66 }
  0xba   :  { %v68_v9 = vadd.f32 %v67_v7, %v64_v6 }
  0xbc   :  { %v71_v10 = vmul.f32 %v70_v8, %v68_v9 }
  0xbe   :  { %176 = vmatpush3.msra.mxu0 %v71_v10 }
  0xbf   :  { %178 = vmatmul.mubr.msk.f32.vlgmr.msra.gmra.mrb[0].mxu0 %vm80_vm1, %v69_v11 }
 0x192   :  { %v150_v18 = vpop.f32.mrb[0].mxu0 }
 0x193   :  { %v151_v19 = vadd.f32 %v150_v18, %v78_v17  ;;  %v179_v20 = vpop.f32.mrb[1].mxu0 }
 0x195   :  { %155 = vst.msk [vmem:[#allocation9] sm:$0x3] %vm154_vm2, %v151_v19 }
 0x196   :  { %240 = shalt.err (!%p237_p6)
}
 0x197   :  { %s241_s18 = scalar_lea.hbm %s333_s4, 32 }
 0x198   :  { %p242_p7 = scmp.ne.s32.totalorder %s333_s4, %s241_s18  ;;  %p245_p8 = scmp.lt.u32.totalorder %s241_s18, %s333_s4 }
 0x19a   :  { %p247_p9 = pnand %p245_p8, %p242_p7 }
 0x19c   :  { %250 = shalt.err (!%p247_p9)
}
 0x19d   :  { %165 = dma.vmem_to_hbm [thread:$0]  %s163_s16, 32, %s333_s4, [#allocation6]  }
 0x19e   :  { %255 = dma.done.wait [#allocation6], 32  }
 0x19f   :  { %256 = vsyncadd [#allocation6], 4294967264 }
 0x1a0   :  { %169 = vsyncpa [#allocation5], 1 }
 0x1a1   :  { %170 = vsyncpa [#allocation8], 1 }
 0x1a2   :  { %171 = vsyncpa [#allocation6], 1 }

</bundles_post_ra>
